<compile_context>
chip_gen: v5e
topology: v5e:2x2
jax: 0.10.0
libtpu: 0.0.40
codegen_flags: <defaults>
</compile_context>

<pallas_src>
import math

import jax
import jax.numpy as jnp
from jax.experimental import pallas as pl
from jax.experimental.pallas import tpu as pltpu


# --------------------------------------------------------------------------- #
# Kernels
# --------------------------------------------------------------------------- #
def _rope_trig_kernel(x_ref, pos_ref, freq_ref, out_ref):
    """Fused RoPE on a (tile_rows, width) block; coefficients computed in-kernel.

    freq_ref lanes (per d_k-wide segment): lane 2i -> -f_i, lane 2i+1 -> +f_i.
    With signed frequencies, ang = pos * freq gives
        cos(ang) ==  cos(pos*f_i)  on both lanes of a pair   (cos is even)
        sin(ang) == -/+ sin(pos*f_i) on even/odd lanes        (signed sine)
    so  out = x * cos(ang) + pair_swap(x) * sin(ang).
    """
    x = x_ref[...].astype(jnp.float32)            # (T, W)
    freq = freq_ref[...].astype(jnp.float32)      # (1, W)
    t, w = x.shape
    f = pos_ref.shape[-1]                         # folded heads per 128-lane row
    seg_w = w // f

    lane = jax.lax.broadcasted_iota(jnp.int32, (1, w), 1)   # hoisted (1, W) mask
    is_even = (lane & 1) == 0

    pos = pos_ref[...].astype(jnp.float32)        # (T, F)
    if f == 1:
        pos_lane = pos                            # (T, 1) broadcasts along lanes
    else:
        seg = lane // seg_w                       # (1, W) segment id
        pos_lane = pos[:, 0:1]
        for s in range(1, f):                     # small static loop (F <= 64)
            pos_lane = jnp.where(seg == s, pos[:, s:s + 1], pos_lane)

    ang = pos_lane * freq                         # (T, W)
    cos_t = jnp.cos(ang)                          # pair cosine on both lanes
    sin_signed = jnp.sin(ang)                     # -sin on even, +sin on odd

    # partner[l] = x[l ^ 1]  (within-pair swap via XLU lane rolls; wrapped
    # lanes are never selected by the parity mask).
    partner = jnp.where(is_even,
                        pltpu.roll(x, shift=w - 1, axis=1),   # x[l+1] on even lanes
                        pltpu.roll(x, shift=1, axis=1))       # x[l-1] on odd lanes

    out_ref[...] = (x * cos_t + partner * sin_signed).astype(out_ref.dtype)


def _rope_packed_kernel(x_ref, coeff_ref, out_ref):
    """Fallback: RoPE from a pre-gathered packed cos/sin stream (previous kernel).

    coeff lanes per row: [cos_0, sin_0, cos_1, sin_1, ...]
    """
    x = x_ref[...].astype(jnp.float32)
    c = coeff_ref[...].astype(jnp.float32)
    t, w = x.shape

    lane = jax.lax.broadcasted_iota(jnp.int32, (1, w), 1)
    is_even = (lane & 1) == 0

    partner = jnp.where(is_even,
                        pltpu.roll(x, shift=w - 1, axis=1),
                        pltpu.roll(x, shift=1, axis=1))
    cos_full = jnp.where(is_even, c, pltpu.roll(c, shift=1, axis=1))
    sin_signed = jnp.where(is_even, -pltpu.roll(c, shift=w - 1, axis=1), c)

    out_ref[...] = (x * cos_full + partner * sin_signed).astype(out_ref.dtype)


# --------------------------------------------------------------------------- #
# One-time capability probe: does this Mosaic build lower sin/cos in-kernel?
# --------------------------------------------------------------------------- #
_TRIG_SUPPORTED = None


def _in_kernel_trig_supported() -> bool:
    global _TRIG_SUPPORTED
    if _TRIG_SUPPORTED is None:
        def probe(x_ref, o_ref):
            o_ref[...] = jnp.sin(x_ref[...]) + jnp.cos(x_ref[...])
        try:
            jax.block_until_ready(
                pl.pallas_call(
                    probe, out_shape=jax.ShapeDtypeStruct((8, 128), jnp.float32)
                )(jnp.zeros((8, 128), jnp.float32)))
            _TRIG_SUPPORTED = True
        except Exception:
            _TRIG_SUPPORTED = False
    return _TRIG_SUPPORTED


# --------------------------------------------------------------------------- #
# Module wrapper
# --------------------------------------------------------------------------- #
class RotaryPositionalEmbedding:
    def __init__(self, theta: float, d_k: int, max_seq_len: int):
        assert d_k % 2 == 0, "d_k must be even for RoPE"
        self.theta, self.d_k, self.max_seq_len = theta, d_k, max_seq_len

        inv_freq = 1.0 / theta ** (jnp.arange(0, d_k, 2, dtype=jnp.float32) / d_k)
        # Signed per-lane frequency table: lane 2i -> -f_i, lane 2i+1 -> +f_i.
        self.signed_lane_freq = jnp.stack([-inv_freq, inv_freq], axis=-1).reshape(d_k)

        # Packed cos/sin cache (lane 2i = cos_i, 2i+1 = sin_i): fallback path only.
        angles = jnp.outer(jnp.arange(max_seq_len, dtype=jnp.float32), inv_freq)
        self.packed_cache = jnp.stack([jnp.cos(angles), jnp.sin(angles)],
                                      axis=-1).reshape(max_seq_len, d_k)

    def __call__(self, x: jax.Array, token_positions: jax.Array,
                 *, max_tile_rows: int = 2048) -> jax.Array:
        d = x.shape[-1]
        assert d == self.d_k
        rows = math.prod(x.shape[:-1])
        pos = token_positions.reshape(rows).astype(jnp.int32)

        # Fold F = 128/d_k heads into one 128-lane row when possible so the
        # output stays lane-dense (unmasked full-width stores).
        fold = 1
        if d < 128 and 128 % d == 0 and rows % (128 // d) == 0:
            fold = 128 // d
        rows_eff, width = rows // fold, d * fold
        x2 = x.reshape(rows_eff, width)

        # Tile selection: biggest tile that amortizes the ~0.35 us per-step
        # overhead; even tile count (when tiled) to balance v7x's two TCs.
        if rows_eff <= max_tile_rows:
            tile_rows = rows_eff
        else:
            n_tiles = pl.cdiv(rows_eff, max_tile_rows)
            n_tiles += n_tiles % 2
            tile_rows = ((pl.cdiv(rows_eff, n_tiles) + 7) // 8) * 8
        grid = (pl.cdiv(rows_eff, tile_rows),)
        xspec = pl.BlockSpec((tile_rows, width), lambda i: (i, 0))
        cparams = pltpu.CompilerParams(
            dimension_semantics=("parallel",),      # shard row tiles across TCs
            vmem_limit_bytes=32 * 1024 * 1024,
        )

        if _in_kernel_trig_supported():
            pos2 = pos.reshape(rows_eff, fold)
            lane_freq = jnp.tile(self.signed_lane_freq, fold).reshape(1, width)
            n_elems = rows * d
            cost = pl.CostEstimate(
                flops=4 * n_elems,
                transcendentals=2 * n_elems,
                bytes_accessed=2 * x2.size * x2.dtype.itemsize + 4 * pos.size + 4 * width,
            )
            out = pl.pallas_call(
                _rope_trig_kernel,
                grid=grid,
                in_specs=[xspec,
                          pl.BlockSpec((tile_rows, fold), lambda i: (i, 0)),
                          pl.BlockSpec((1, width), lambda i: (0, 0))],   # VMEM-resident
                out_specs=xspec,
                out_shape=jax.ShapeDtypeStruct((rows_eff, width), x.dtype),
                compiler_params=cparams,
                cost_estimate=cost,
            )(x2, pos2, lane_freq)
        else:
            # Fallback: materialize packed coefficients with an XLA gather and
            # stream them (previous, proven kernel).  Match coeff dtype to x
            # for bf16 inputs to halve the extra stream.
            coeff = self.packed_cache[pos]
            if x.dtype == jnp.bfloat16:
                coeff = coeff.astype(jnp.bfloat16)
            coeff2 = coeff.reshape(rows_eff, width)
            out = pl.pallas_call(
                _rope_packed_kernel,
                grid=grid,
                in_specs=[xspec, xspec],
                out_specs=xspec,
                out_shape=jax.ShapeDtypeStruct((rows_eff, width), x.dtype),
                compiler_params=cparams,
            )(x2, coeff2)

        return out.reshape(x.shape)


# --------------------------------------------------------------------------- #
# Pure-JAX reference mirroring the PyTorch forward exactly
# --------------------------------------------------------------------------- #
def _rope_reference(x, token_positions, theta, d_k, max_seq_len):
    inv_freq = 1.0 / theta ** (jnp.arange(0, d_k, 2, dtype=jnp.float32) / d_k)
    angles = jnp.outer(jnp.arange(max_seq_len, dtype=jnp.float32), inv_freq)
    cos_vals = jnp.cos(angles)[token_positions]
    sin_vals = jnp.sin(angles)[token_positions]
    xp = x.reshape(*x.shape[:-1], d_k // 2, 2)
    r0 = xp[..., 0] * cos_vals - xp[..., 1] * sin_vals
    r1 = xp[..., 0] * sin_vals + xp[..., 1] * cos_vals
    return jnp.stack([r0, r1], axis=-1).reshape(x.shape)


if __name__ == "__main__":
    theta = 10000.0
    max_seq_len = 16
    batch, seq = 2, 8
    key = jax.random.PRNGKey(0)

    # d_k=128: lane-dense head dim; d_k=64: exercises the 2-heads-per-row fold.
    for d_k in (128, 64):
        rope = RotaryPositionalEmbedding(theta, d_k, max_seq_len)
        key, kx, kp = jax.random.split(key, 3)
        x = jax.random.normal(kx, (batch, seq, d_k), dtype=jnp.float32)
        token_positions = jax.random.randint(kp, (batch, seq), 0, max_seq_len,
                                             dtype=jnp.int32)

        out = jax.block_until_ready(rope(x, token_positions))
        ref = _rope_reference(x, token_positions, theta, d_k, max_seq_len)

        assert out.shape == x.shape and out.dtype == x.dtype
        err = float(jnp.max(jnp.abs(out - ref)))
        # In-kernel sin/cos may differ from XLA's by a few ulp; 1e-4 abs is ample
        # for f32 RoPE coefficients at these angle magnitudes.
        assert err < 1e-4, f"d_k={d_k} max abs err {err}"

    print("KERNEL_OK")
</pallas_src>

<mosaic_0001>
module attributes {stable_mosaic.version = 11 : i64} {
  func.func @probe(%arg0: memref<8x128xf32, #tpu.memory_space<vmem>>, %arg1: memref<8x128xf32, #tpu.memory_space<vmem>>) attributes {dimension_semantics = [], scalar_prefetch = 0 : i64, scratch_operands = 0 : i64, tpu.core_type = #tpu.core_type<tc>} {
    %c0 = arith.constant 0 : index
    %c0_0 = arith.constant 0 : index
    %0 = vector.load %arg0[%c0, %c0_0] : memref<8x128xf32, #tpu.memory_space<vmem>>, vector<8x128xf32>
    %1 = math.sin %0 : vector<8x128xf32>
    %c0_1 = arith.constant 0 : index
    %c0_2 = arith.constant 0 : index
    %2 = vector.load %arg0[%c0_1, %c0_2] : memref<8x128xf32, #tpu.memory_space<vmem>>, vector<8x128xf32>
    %3 = math.cos %2 : vector<8x128xf32>
    %4 = arith.addf %1, %3 : vector<8x128xf32>
    %c0_3 = arith.constant 0 : index
    %c0_4 = arith.constant 0 : index
    %5 = vector.load %arg1[%c0_3, %c0_4] : memref<8x128xf32, #tpu.memory_space<vmem>>, vector<8x128xf32>
    tpu.vector_store %arg1[%c0_3, %c0_4], %4 {strides = array<i32>} : memref<8x128xf32, #tpu.memory_space<vmem>>, vector<8x128xf32>,
    return
  }
}

module attributes {stable_mosaic.version = 11 : i64} {
  func.func @_rope_packed_kernel(%arg0: i32, %arg1: memref<16x128xf32, #tpu.memory_space<vmem>>, %arg2: memref<16x128xf32, #tpu.memory_space<vmem>>, %arg3: memref<16x128xf32, #tpu.memory_space<vmem>>) attributes {dimension_semantics = [#tpu.dimension_semantics<parallel>], iteration_bounds = array<i64: 1>, scalar_prefetch = 0 : i64, scratch_operands = 0 : i64, tpu.core_type = #tpu.core_type<tc>, window_params = [{transform_indices = @transform_0, window_bounds = array<i64: 16, 128>}, {transform_indices = @transform_1, window_bounds = array<i64: 16, 128>}, {transform_indices = @transform_2, window_bounds = array<i64: 16, 128>}]} {
    %c0 = arith.constant 0 : index
    %c0_0 = arith.constant 0 : index
    %0 = vector.load %arg1[%c0, %c0_0] : memref<16x128xf32, #tpu.memory_space<vmem>>, vector<16x128xf32>
    %c0_1 = arith.constant 0 : index
    %c0_2 = arith.constant 0 : index
    %1 = vector.load %arg2[%c0_1, %c0_2] : memref<16x128xf32, #tpu.memory_space<vmem>>, vector<16x128xf32>
    %2 = tpu.iota {dimensions = array<i32: 1>} : vector<1x128xi32>
    %c1_i32 = arith.constant 1 : i32
    %3 = vector.broadcast %c1_i32 : i32 to vector<1x128xi32>
    %4 = arith.andi %2, %3 : vector<1x128xi32>
    %c0_i32 = arith.constant 0 : i32
    %5 = vector.broadcast %c0_i32 : i32 to vector<1x128xi32>
    %6 = arith.cmpi eq, %4, %5 : vector<1x128xi32>
    %c127_i32 = arith.constant 127 : i32
    %7 = tpu.dynamic_rotate %0 by %c127_i32 dim 1 : vector<16x128xf32>, i32 -> vector<16x128xf32>
    %c1_i32_3 = arith.constant 1 : i32
    %8 = tpu.dynamic_rotate %0 by %c1_i32_3 dim 1 : vector<16x128xf32>, i32 -> vector<16x128xf32>
    %9 = vector.shape_cast %6 : vector<1x128xi1> to vector<1x128xi1>
    %10 = vector.broadcast %9 : vector<1x128xi1> to vector<16x128xi1>
    %11 = arith.select %10, %7, %8 : vector<16x128xi1>, vector<16x128xf32>
    %c1_i32_4 = arith.constant 1 : i32
    %12 = tpu.dynamic_rotate %1 by %c1_i32_4 dim 1 : vector<16x128xf32>, i32 -> vector<16x128xf32>
    %13 = vector.shape_cast %6 : vector<1x128xi1> to vector<1x128xi1>
    %14 = vector.broadcast %13 : vector<1x128xi1> to vector<16x128xi1>
    %15 = arith.select %14, %1, %12 : vector<16x128xi1>, vector<16x128xf32>
    %c127_i32_5 = arith.constant 127 : i32
    %16 = tpu.dynamic_rotate %1 by %c127_i32_5 dim 1 : vector<16x128xf32>, i32 -> vector<16x128xf32>
    %cst = arith.constant 0.000000e+00 : f32
    %17 = vector.broadcast %cst : f32 to vector<16x128xf32>
    %18 = arith.subf %17, %16 : vector<16x128xf32>
    %19 = vector.shape_cast %6 : vector<1x128xi1> to vector<1x128xi1>
    %20 = vector.broadcast %19 : vector<1x128xi1> to vector<16x128xi1>
    %21 = arith.select %20, %18, %1 : vector<16x128xi1>, vector<16x128xf32>
    %22 = arith.mulf %0, %15 : vector<16x128xf32>
    %23 = arith.mulf %11, %21 : vector<16x128xf32>
    %24 = arith.addf %22, %23 : vector<16x128xf32>
    %c0_6 = arith.constant 0 : index
    %c0_7 = arith.constant 0 : index
    %25 = vector.load %arg3[%c0_6, %c0_7] : memref<16x128xf32, #tpu.memory_space<vmem>>, vector<16x128xf32>
    tpu.vector_store %arg3[%c0_6, %c0_7], %24 {strides = array<i32>} : memref<16x128xf32, #tpu.memory_space<vmem>>, vector<16x128xf32>,
    return
  }
  func.func @transform_0(%arg0: i32) -> (i32, i32) {
    %c0_i32 = arith.constant 0 : i32
    %c0_i32_0 = arith.constant 0 : i32
    return %arg0, %c0_i32 : i32, i32
  }
  func.func @transform_1(%arg0: i32) -> (i32, i32) {
    %c0_i32 = arith.constant 0 : i32
    %c0_i32_0 = arith.constant 0 : i32
    return %arg0, %c0_i32 : i32, i32
  }
  func.func @transform_2(%arg0: i32) -> (i32, i32) {
    %c0_i32 = arith.constant 0 : i32
    %c0_i32_0 = arith.constant 0 : i32
    return %arg0, %c0_i32 : i32, i32
  }
}

</mosaic_0001>

<bundles_post_ra>
// kernel: tpu_custom_call.1
= control target key start
LH: loop header
LB: loop body
LE: loop exit
PB: predicated region body
PF: predicated region fallthrough
CT: control target
= control target key end

     0   :  { %6 = vsyncpa [#allocation3], 0  ;;  %s490_s0 = inlined_call_operand.hbm [shape: f32[8,128], index: 0, kind: input, shape index: {}]   ;;  %s491_s1 = inlined_call_operand.hbm [shape: f32[8,128], index: 1, kind: output, shape index: {}]  }
   0x1   :  { %7 = vsyncpa [#allocation4], 0  ;;  %s13_s8 = sshll.u32 %s490_s0, 4  ;;  %s419_s9 = smov [#allocation2]   ;;  %s14_s8 = int_to_ptr.hbm [resolvable:$true] %s13_s8 }
   0x2   :  { %s15_s10 = sshll.u32 %s419_s9, 4  ;;  %s16_s10 = int_to_ptr.vmem [resolvable:$true] %s15_s10 }
   0x3   :  { %18 = dma.hbm_to_vmem [thread:$0]  %s14_s8, 128, %s16_s10, [#allocation3]  }
   0x4   :  { %415 = dma.done.wait [#allocation3], 128  }
   0x5   :  { %416 = vsyncadd [#allocation3], 4294967168  ;;  %v441_v0 = vld [vmem:[#allocation2] sm:$0xff]  ;;  %v420_v12 = vmov 683565275   ;;  %s427_s0 = smov [#allocation5]  }
   0x6   :  { %v27_v1 = vand.u32 2139095040, %v441_v0  ;;  %v24_v3 = vand.u32 2147483647, %v441_v0  ;;  %v421_v14 = vmov 2475754826   ;;  %vm26_vm12 = vcmp.lt.s32.totalorder %v441_v0, 0 }
   0x7   :  { %v422_v16 = vmov 2131351028   ;;  %v423_v18 = vmov 2102212464   ;;  %v424_v20 = vmov 920167782  }
   0x8   :  { %v28_v2 = vshrl.u32 %v27_v1, 23  ;;  %v31_v6 = vand.u32 8388607, %v24_v3  ;;  %v425_v26 = vmov 1326507024   ;;  %v426_v1 = vmov 0  }
   0x9   :  { %vm25_vm13 = vcmp.le.f32.partialorder %v24_v3, 0.7853982  ;;  %s340_s11 = sshll.u32 %s427_s0, 4  ;;  %s342_s14 = sshll.u32 %s491_s1, 4  ;;  %s341_s11 = int_to_ptr.vmem [resolvable:$true] %s340_s11  ;;  %s343_s14 = int_to_ptr.hbm [resolvable:$true] %s342_s14 }
   0xa   :  { %v352_v4 = vadd.s32 4294967169, %v28_v2  ;;  %v32_v9 = vor.u32 8388608, %v31_v6 }
   0xc   :  { %v34_v5 = vadd.s32 1, %v352_v4  ;;  %v450_v28 = vshll.u32 %v32_v9, 8 }
   0xe   :  { %vm35_vm0 = vcmp.gt.s32.totalorder %v34_v5, 0  ;;  %v73_v40 = vand.u32 65535, %v450_v28  ;;  %v74_v41 = vshrl.u32 %v450_v28, 16 }
   0xf   :  { %v36_v7 = vsel %vm35_vm0, %v34_v5, 0 }
  0x10   :  { %v38_v8 = vand.u32 31, %v36_v7  ;;  %v447_v10 = vshrl.u32 %v36_v7, 5 }
  0x12   :  { %v39_v11 = vsub.s32 32, %v38_v8  ;;  %v41_v13 = vshll.u32 %v420_v12, %v38_v8  ;;  %v44_v15 = vshll.u32 %v421_v14, %v38_v8  ;;  %v47_v17 = vshll.u32 %v422_v16, %v38_v8 }
  0x13   :  { %v50_v19 = vshll.u32 %v423_v18, %v38_v8  ;;  %v53_v21 = vshll.u32 %v424_v20, %v38_v8  ;;  %vm56_vm1 = vcmp.lt.s32.totalorder %v447_v10, 1  ;;  %vm59_vm2 = vcmp.lt.s32.totalorder %v447_v10, 4 }
  0x14   :  { %v42_v22 = vshrl.u32 %v421_v14, %v39_v11  ;;  %v45_v23 = vshrl.u32 %v422_v16, %v39_v11  ;;  %v48_v24 = vshrl.u32 %v423_v18, %v39_v11  ;;  %v51_v25 = vshrl.u32 %v424_v20, %v39_v11 }
  0x15   :  { %v54_v27 = vshrl.u32 %v425_v26, %v39_v11  ;;  %vm58_vm3 = vcmp.lt.s32.totalorder %v447_v10, 3  ;;  %vm57_vm4 = vcmp.lt.s32.totalorder %v447_v10, 2  ;;  %v40_v48 = vshrl.u32 %v420_v12, %v39_v11 }
  0x16   :  { %v43_v29 = vor.u32 %v42_v22, %v41_v13  ;;  %v46_v30 = vor.u32 %v45_v23, %v44_v15  ;;  %v49_v31 = vor.u32 %v48_v24, %v47_v17  ;;  %v52_v32 = vor.u32 %v51_v25, %v50_v19 }
  0x17   :  { %v55_v33 = vor.u32 %v54_v27, %v53_v21 }
  0x18   :  { %v64_v34 = vsel %vm56_vm1, %v43_v29, %v46_v30  ;;  %v68_v35 = vsel %vm56_vm1, %v46_v30, %v49_v31  ;;  %v65_v36 = vsel %vm59_vm2, %v52_v32, 920167782  ;;  %v60_v61 = vsel %vm56_vm1, %v40_v48, %v43_v29 }
  0x19   :  { %v69_v37 = vsel %vm59_vm2, %v55_v33, 1326507024  ;;  %v66_v38 = vsel %vm58_vm3, %v49_v31, %v65_v36  ;;  %v61_v63 = vsel %vm59_vm2, %v49_v31, 2102212464 }
  0x1a   :  { %v70_v39 = vsel %vm58_vm3, %v52_v32, %v69_v37  ;;  %v67_v42 = vsel %vm57_vm4, %v64_v34, %v66_v38  ;;  %v62_v12 = vsel %vm58_vm3, %v46_v30, %v61_v63 }
  0x1b   :  { %v71_v43 = vsel %vm57_vm4, %v68_v35, %v70_v39  ;;  %v97_v46 = vand.u32 65535, %v67_v42  ;;  %v98_v47 = vshrl.u32 %v67_v42, 16  ;;  %v63_v20 = vsel %vm57_vm4, %v60_v61, %v62_v12 }
  0x1c   :  { %v75_v44 = vand.u32 65535, %v71_v43  ;;  %v76_v45 = vshrl.u32 %v71_v43, 16  ;;  %v117_v24 = vmul.u32 %v450_v28, %v63_v20  ;;  %vm167_vm4 = vweird.f32 %v441_v0 }
  0x1d   :  { %v99_v52 = vmul.u32 %v97_v46, %v73_v40  ;;  %v100_v53 = vmul.u32 %v98_v47, %v73_v40  ;;  %v101_v54 = vmul.u32 %v97_v46, %v74_v41  ;;  %v102_v58 = vmul.u32 %v98_v47, %v74_v41 }
  0x1e   :  { %v77_v49 = vmul.u32 %v75_v44, %v73_v40  ;;  %v78_v50 = vmul.u32 %v76_v45, %v73_v40  ;;  %v79_v51 = vmul.u32 %v75_v44, %v74_v41  ;;  %v80_v55 = vmul.u32 %v76_v45, %v74_v41 }
  0x1f   :  { %v103_v59 = vshll.u32 %v100_v53, 16  ;;  %v105_v60 = vshll.u32 %v101_v54, 16  ;;  %v104_v9 = vshrl.u32 %v100_v53, 16  ;;  %v106_v16 = vshrl.u32 %v101_v54, 16 }
  0x20   :  { %v81_v56 = vshll.u32 %v78_v50, 16  ;;  %v83_v57 = vshll.u32 %v79_v51, 16  ;;  %v82_v5 = vshrl.u32 %v78_v50, 16  ;;  %v84_v13 = vshrl.u32 %v79_v51, 16 }
  0x21   :  { %vm107_vm6 = vc.u32 %v99_v52, %v103_v59  ;;  %v109_v4 = vadd.s32 %v103_v59, %v99_v52 }
  0x22   :  { %vm85_vm5 = vc.u32 %v77_v49, %v81_v56  ;;  %v87_v62 = vadd.s32 %v81_v56, %v77_v49  ;;  %v108_v7 = vsel %vm107_vm6, 1, %v426_v1 }
  0x23   :  { %v86_v2 = vsel %vm85_vm5, 1, %v426_v1  ;;  %v110_v11 = vadd.s32 %v108_v7, %v102_v58  ;;  %vm111_vm8 = vc.u32 %v109_v4, %v105_v60  ;;  %v113_v19 = vadd.s32 %v109_v4, %v105_v60 }
  0x24   :  { %v88_v6 = vadd.s32 %v86_v2, %v80_v55  ;;  %vm89_vm7 = vc.u32 %v87_v62, %v83_v57  ;;  %v112_v15 = vsel %vm111_vm8, 1, %v426_v1 }
  0x25   :  { %v90_v8 = vsel %vm89_vm7, 1, %v426_v1  ;;  %v114_v17 = vadd.s32 %v112_v15, %v110_v11 }
  0x26   :  { %v92_v14 = vadd.s32 %v90_v8, %v88_v6 }
  0x27   :  { %v115_v21 = vadd.s32 %v114_v17, %v104_v9 }
  0x28   :  { %v93_v18 = vadd.s32 %v92_v14, %v82_v5 }
  0x29   :  { %v116_v23 = vadd.s32 %v115_v21, %v106_v16 }
  0x2a   :  { %v94_v22 = vadd.s32 %v93_v18, %v84_v13 }
  0x2b   :  { %v120_v25 = vadd.s32 1, %v116_v23 }
  0x2c   :  { %vm119_vm9 = vc.u32 %v94_v22, %v113_v19  ;;  %v118_v10 = vadd.s32 %v113_v19, %v94_v22 }
  0x2d   :  { %v121_v26 = vsel %vm119_vm9, %v120_v25, %v116_v23 }
  0x2e   :  { %v122_v27 = vadd.s32 %v121_v26, %v117_v24 }
  0x30   :  { %v123_v29 = vadd.s32 536870912, %v122_v27 }
  0x32   :  { %v124_v30 = vshrl.u32 %v123_v29, 30 }
  0x34   :  { %v125_v31 = vshll.u32 %v124_v30, 30  ;;  %v148_v48 = vsub.s32 4, %v124_v30 }
  0x36   :  { %v126_v32 = vsub.s32 %v122_v27, %v125_v31  ;;  %v149_v51 = vsel %vm26_vm12, %v148_v48, %v124_v30 }
  0x37   :  { %v151_v54 = vsel %vm25_vm13, 0, %v149_v51 }
  0x38   :  { %vm127_vm10 = vcmp.lt.s32.totalorder %v126_v32, 0  ;;  %v128_v33 = vsub.s32 0, %v126_v32  ;;  %v168_v59 = vadd.s32 3, %v151_v54  ;;  %v323_v2 = vand.u32 3, %v151_v54 }
  0x3a   :  { %v129_v34 = vsel %vm127_vm10, %v128_v33, %v126_v32  ;;  %v169_v1 = vand.u32 3, %v168_v59  ;;  %vm328_vm15 = vcmp.eq.s32.totalorder %v323_v2, 2  ;;  %vm325_vm2 = vcmp.eq.s32.totalorder %v323_v2, 0 }
  0x3b   :  { %v130_v35 = vclz %v129_v34  ;;  %vm324_vm3 = vcmp.lt.s32.totalorder %v323_v2, 2 }
  0x3c   :  { %vm174_vm14 = vcmp.eq.s32.totalorder %v169_v1, 2  ;;  %vm170_vm0 = vcmp.lt.s32.totalorder %v169_v1, 2  ;;  %vm171_vm1 = vcmp.eq.s32.totalorder %v169_v1, 0 }
  0x3d   :  { %v353_v36 = vadd.s32 4294967294, %v130_v35 }
  0x3f   :  { %vm354_vm11 = vcmp.lt.s32.totalorder %v353_v36, 0 }
  0x40   :  { %v133_v37 = vsel %vm354_vm11, 0, %v353_v36 }
  0x41   :  { %v134_v38 = vsub.s32 32, %v133_v37  ;;  %v135_v39 = vshll.u32 %v126_v32, %v133_v37  ;;  %v138_v40 = vsub.s32 4294967266, %v133_v37 }
  0x43   :  { %v136_v28 = vshrl.u32 %v118_v10, %v134_v38  ;;  %v139_v41 = vadd.s32 127, %v138_v40 }
  0x45   :  { %v137_v42 = vor.u32 %v136_v28, %v135_v39  ;;  %v140_v43 = vshll.u32 %v139_v41, 23 }
  0x47   :  { %v141_v44 = vor.u32 4788187, %v140_v43  ;;  %v144_v45 = vcvt.s32.f32 %v137_v42 }
  0x49   :  { %v142_v46 = vand.u32 2147483647, %v141_v44 }
  0x4b   :  { %v145_v47 = vmul.f32 %v144_v45, %v142_v46 }
  0x4d   :  { %v146_v49 = vxor.u32 2147483648, %v145_v47 }
  0x4f   :  { %v147_v50 = vsel %vm26_vm12, %v146_v49, %v145_v47 }
  0x50   :  { %v150_v52 = vsel %vm25_vm13, %v441_v0, %v147_v50 }
  0x51   :  { %v152_v53 = vmul.f32 %v150_v52, %v150_v52 }
  0x53   :  { %v153_v55 = vmul.f32 -0.001358992, %v152_v53  ;;  %v160_v56 = vmul.f32 -0.00019511016, %v152_v53 }
  0x55   :  { %v154_v57 = vadd.f32 0.041655596, %v153_v55  ;;  %v161_v58 = vadd.f32 0.008332121, %v160_v56 }
  0x57   :  { %v155_v60 = vmul.f32 %v154_v57, %v152_v53  ;;  %v162_v61 = vmul.f32 %v161_v58, %v152_v53 }
  0x59   :  { %v156_v62 = vadd.f32 -0.4999988, %v155_v60  ;;  %v163_v63 = vadd.f32 -0.16666654, %v162_v61 }
  0x5b   :  { %v157_v4 = vmul.f32 %v156_v62, %v152_v53  ;;  %v164_v3 = vmul.f32 %v163_v63, %v152_v53 }
  0x5d   :  { %v158_v5 = vadd.f32 1.0, %v157_v4  ;;  %v165_v6 = vadd.f32 1.0, %v164_v3 }
  0x5f   :  { %v166_v7 = vmul.f32 %v165_v6, %v150_v52  ;;  %v175_v8 = vxor.u32 2147483648, %v158_v5 }
  0x61   :  { %v172_v9 = vxor.u32 2147483648, %v166_v7  ;;  %v176_v11 = vsel %vm174_vm14, %v175_v8, %v166_v7  ;;  %v330_v12 = vsel %vm328_vm15, %v175_v8, %v166_v7 }
  0x63   :  { %v173_v13 = vsel %vm171_vm1, %v158_v5, %v172_v9  ;;  %v327_v14 = vsel %vm325_vm2, %v158_v5, %v172_v9 }
  0x64   :  { %v177_v15 = vsel %vm170_vm0, %v173_v13, %v176_v11  ;;  %v331_v16 = vsel %vm324_vm3, %v327_v14, %v330_v12 }
  0x65   :  { %v178_v17 = vsel %vm167_vm4, nan, %v177_v15  ;;  %v332_v18 = vsel %vm167_vm4, nan, %v331_v16 }
  0x66   :  { %v333_v19 = vadd.f32 %v332_v18, %v178_v17 }
  0x68   :  { %334 = vst [vmem:[#allocation5] sm:$0xff] %v333_v19 }
  0x69   :  { %345 = dma.vmem_to_hbm [thread:$0]  %s341_s11, 128, %s343_s14, [#allocation4]  }
  0x6a   :  { %417 = dma.done.wait [#allocation4], 128  }
  0x6b   :  { %418 = vsyncadd [#allocation4], 4294967168 }
  0x6c   :  { %350 = vsyncpa [#allocation3], 1 }
  0x6d   :  { %351 = vsyncpa [#allocation4], 1 }

// kernel: tpu_custom_call.1
= control target key start
LH: loop header
LB: loop body
LE: loop exit
PB: predicated region body
PF: predicated region fallthrough
CT: control target
= control target key end

     0   :  { %7 = vsyncpa [#allocation3], 0  ;;  %s231_s0 = inlined_call_operand.hbm [shape: f32[16,128], index: 0, kind: input, shape index: {}]   ;;  %s232_s1 = inlined_call_operand.hbm [shape: f32[16,128], index: 1, kind: input, shape index: {}]   ;;  %s233_s2 = inlined_call_operand.hbm [shape: f32[16,128], index: 2, kind: output, shape index: {}]  }
   0x1   :  { %8 = vsyncpa [#allocation6], 0 }
   0x2   :  { %9 = vsyncpa [#allocation4], 0  ;;  %s14_s11 = sshll.u32 %s231_s0, 4  ;;  %s191_s12 = smov [#allocation2]   ;;  %s15_s11 = int_to_ptr.hbm [resolvable:$true] %s14_s11 }
   0x3   :  { %s16_s13 = sshll.u32 %s191_s12, 4  ;;  %s27_s16 = sshll.u32 %s232_s1, 4  ;;  %s17_s13 = int_to_ptr.vmem [resolvable:$true] %s16_s13  ;;  %s28_s16 = int_to_ptr.hbm [resolvable:$true] %s27_s16 }
   0x4   :  { %s192_s17 = smov 128   ;;  %s193_s18 = smov 8  }
   0x5   :  { %22 = dma.hbm_to_vmem [thread:$0]  %s15_s11, 256, %s17_s13, [#allocation3], %s192_s17, %s192_s17, %s193_s18  }
   0x6   :  { %s194_s19 = smov [#allocation5]  }
   0x7   :  { %s29_s20 = sshll.u32 %s194_s19, 4  ;;  %s30_s20 = int_to_ptr.vmem [resolvable:$true] %s29_s20 }
   0x8   :  { %35 = dma.hbm_to_vmem [thread:$0]  %s28_s16, 256, %s30_s20, [#allocation6], %s192_s17, %s192_s17, %s193_s18  }
   0x9   :  { %185 = dma.done.wait [#allocation3], 256  }
   0xa   :  { %186 = vsyncadd [#allocation3], 4294967040 }
   0xb   :  { %187 = dma.done.wait [#allocation6], 256  }
   0xc   :  { %188 = vsyncadd [#allocation6], 4294967040  ;;  %v46_v0 = vld [vmem:[#allocation5] sm:$0xff]  ;;  %v44_v1 = vld [vmem:[#allocation2] sm:$0xff]  ;;  %s195_s0 = smov 127   ;;  %s196_s1 = smov 1   ;;  %v48_v6 = vlaneseq }
   0xd   :  { %70 = vrot.lane.b32.xlu0 %v46_v0, %s195_s0  ;;  %52 = vrot.lane.b32.xlu1 %v44_v1, %s195_s0  ;;  %v47_v2 = vld [vmem:[#allocation5 + $0x8] sm:$0xff]  ;;  %v45_v3 = vld [vmem:[#allocation2 + $0x8] sm:$0xff]  ;;  %s197_s21 = smov [#allocation7]   ;;  %s92_s25 = sshll.u32 %s233_s2, 4  ;;  %s93_s25 = int_to_ptr.hbm [resolvable:$true] %s92_s25 }
   0xe   :  { %56 = vrot.lane.b32.xlu2 %v44_v1, %s196_s1  ;;  %v49_v8 = vand.u32 127, %v48_v6  ;;  %s90_s22 = sshll.u32 %s197_s21, 4  ;;  %s91_s22 = int_to_ptr.vmem [resolvable:$true] %s90_s22 }
  0x10   :  { %v50_v11 = vand.u32 1, %v49_v8 }
  0x12   :  { %vm51_vm0 = vcmp.eq.s32.totalorder %v50_v11, 0 }
  0x15   :  { %72 = vrot.lane.b32.xlu0 %v47_v2, %s195_s0  ;;  %54 = vrot.lane.b32.xlu1 %v45_v3, %s195_s0 }
  0x16   :  { %58 = vrot.lane.b32.xlu2 %v45_v3, %s196_s1 }
  0x1d   :  { %64 = vrot.lane.b32.xlu0 %v46_v0, %s196_s1  ;;  %66 = vrot.lane.b32.xlu1 %v47_v2, %s196_s1 }
  0x68   :  { %v57_v7 = vpop.permute.xlu2 %56 }
  0x70   :  { %v59_v14 = vpop.permute.xlu2 %58 }
  0x7f   :  { %v71_v4 = vpop.permute.xlu0 %70  ;;  %v53_v5 = vpop.permute.xlu1 %52 }
  0x80   :  { %v74_v12 = vsub.f32 0.0, %v71_v4  ;;  %v62_v19 = vsel %vm51_vm0, %v53_v5, %v57_v7 }
  0x82   :  { %v76_v15 = vsel %vm51_vm0, %v74_v12, %v46_v0 }
  0x83   :  { %v80_v23 = vmul.f32 %v76_v15, %v62_v19 }
  0x87   :  { %v73_v9 = vpop.permute.xlu0 %72  ;;  %v55_v10 = vpop.permute.xlu1 %54 }
  0x88   :  { %v75_v13 = vsub.f32 0.0, %v73_v9  ;;  %v63_v20 = vsel %vm51_vm0, %v55_v10, %v59_v14 }
  0x8a   :  { %v77_v16 = vsel %vm51_vm0, %v75_v13, %v47_v2 }
  0x8b   :  { %v81_v24 = vmul.f32 %v77_v16, %v63_v20 }
  0x8f   :  { %v65_v17 = vpop.permute.xlu0 %64  ;;  %v67_v18 = vpop.permute.xlu1 %66 }
  0x90   :  { %v68_v21 = vsel %vm51_vm0, %v46_v0, %v65_v17  ;;  %v69_v22 = vsel %vm51_vm0, %v47_v2, %v67_v18 }
  0x91   :  { %v78_v25 = vmul.f32 %v68_v21, %v44_v1  ;;  %v79_v26 = vmul.f32 %v69_v22, %v45_v3 }
  0x93   :  { %v82_v27 = vadd.f32 %v80_v23, %v78_v25  ;;  %v83_v28 = vadd.f32 %v81_v24, %v79_v26 }
  0x95   :  { %84 = vst [vmem:[#allocation7] sm:$0xff] %v82_v27 }
  0x96   :  { %85 = vst [vmem:[#allocation7 + $0x8] sm:$0xff] %v83_v28 }
  0x97   :  { %98 = dma.vmem_to_hbm [thread:$0]  %s91_s22, 256, %s93_s25, [#allocation4], %s192_s17, %s192_s17, %s193_s18  }
  0x98   :  { %189 = dma.done.wait [#allocation4], 256  }
  0x99   :  { %190 = vsyncadd [#allocation4], 4294967040 }
  0x9a   :  { %103 = vsyncpa [#allocation3], 1 }
  0x9b   :  { %104 = vsyncpa [#allocation6], 1 }
  0x9c   :  { %105 = vsyncpa [#allocation4], 1 }

</bundles_post_ra>
